<compile_context>
chip_gen: v7x
topology: tpu7x:2x2x1
jax: 0.10.0
libtpu: 0.0.40
codegen_flags: <defaults>
</compile_context>

<pallas_src>
import functools

import jax
import jax.numpy as jnp
from jax.experimental import pallas as pl
from jax.experimental.pallas import tpu as pltpu

LANES = 128


def _iou_partial_kernel(x_ref, t_ref, inter_ref, total_ref,
                        inter_acc, total_acc, *,
                        rows, block_rows, steps_per_split, need_mask):
    c = pl.program_id(0)   # split / core index
    k = pl.program_id(1)   # streaming step within the split ("arbitrary")

    @pl.when(k == 0)
    def _init():
        inter_acc[...] = jnp.zeros_like(inter_acc)
        total_acc[...] = jnp.zeros_like(total_acc)

    # Logical (unclamped) first row of this block.
    base_row = (c * steps_per_split + k) * block_rows

    def accumulate(mask_tail):
        x = x_ref[...].astype(jnp.float32)
        t = t_ref[...].astype(jnp.float32)
        # Single-transcendental sigmoid (one EUP push per vreg).
        s = 0.5 * (jnp.tanh(0.5 * x) + 1.0)
        if mask_tail:
            row_ids = jax.lax.broadcasted_iota(
                jnp.int32, (block_rows, LANES), 0)
            valid = (base_row + row_ids) < rows
            s = jnp.where(valid, s, 0.0)
            t = jnp.where(valid, t, 0.0)
        # Lane-shaped accumulation: only a sublane reduce per step; the
        # cross-lane reduce is deferred to a tiny op outside the kernel.
        inter_acc[...] += jnp.sum(s * t, axis=0, keepdims=True)
        total_acc[...] += jnp.sum(s + t, axis=0, keepdims=True)

    if need_mask:
        # Fast path: fully-interior block (no mask work at all).
        @pl.when(base_row + block_rows <= rows)
        def _full():
            accumulate(False)

        # Slow path: the single partial block straddling `rows`.
        @pl.when(jnp.logical_and(base_row < rows,
                                 base_row + block_rows > rows))
        def _tail():
            accumulate(True)
        # Blocks with base_row >= rows are clamped duplicate reads; they are
        # skipped entirely and contribute nothing.
    else:
        accumulate(False)

    @pl.when(k == pl.num_programs(1) - 1)
    def _finalize():
        inter_ref[...] = inter_acc[...].reshape(1, 1, LANES)
        total_ref[...] = total_acc[...].reshape(1, 1, LANES)


def iou_pallas(inputs, targets, smooth=1.0, *, tile_rows=8192, num_splits=1):
    """Soft IoU identical to the PyTorch IOU module (returns scalar f32).

    num_splits=1 is right for single-TensorCore chips (v5e/v6e); pass
    num_splits=2 on v7x to shard the stream across both TensorCores.
    """
    x = jnp.ravel(inputs)        # keep native dtype (bf16/f32/...), no upcast
    t = jnp.ravel(targets)
    if x.dtype == jnp.bool_:
        x = x.astype(jnp.float32)
    if t.dtype == jnp.bool_:
        t = t.astype(jnp.float32)
    n = x.shape[0]

    # Tiny tail pad (< 128 elems) if n is not lane-aligned; padded elements
    # are sigmoid-neutral (sigmoid(-inf) = 0) with zero targets.
    rem = (-n) % LANES
    if rem:
        if jnp.issubdtype(x.dtype, jnp.floating):
            x_pad = -jnp.inf
        else:
            x_pad = jnp.iinfo(x.dtype).min
        x = jnp.pad(x, (0, rem), constant_values=x_pad)
        t = jnp.pad(t, (0, rem), constant_values=0)

    rows = x.shape[0] // LANES
    x2 = x.reshape(rows, LANES)          # zero-copy reshapes
    t2 = t.reshape(rows, LANES)

    # Block rows: full array if small, otherwise a large lane-dense tile.
    tr = rows if rows <= tile_rows else tile_rows
    nblocks = pl.cdiv(rows, tr)
    num_splits = max(1, min(num_splits, nblocks))   # never duplicate reads
    sps = pl.cdiv(nblocks, num_splits)              # steps per split
    need_mask = (num_splits * sps * tr) != rows     # grid over-covers array

    def in_index_map(c, k):
        # Clamp so over-covering steps never issue an OOB block index; their
        # contribution is skipped/zeroed in-kernel.
        return (jnp.minimum(c * sps + k, nblocks - 1), 0)

    kernel = functools.partial(
        _iou_partial_kernel,
        rows=rows, block_rows=tr, steps_per_split=sps, need_mask=need_mask)

    if num_splits > 1:
        # Real core-level sharding on multi-TC chips (v7x).
        dims = (pltpu.CORE_PARALLEL, pltpu.ARBITRARY)
    else:
        dims = ("arbitrary", "arbitrary")

    n_elems = rows * LANES
    cost = pl.CostEstimate(
        flops=6 * n_elems,
        transcendentals=n_elems,
        bytes_accessed=(n_elems * (x2.dtype.itemsize + t2.dtype.itemsize)
                        + 2 * num_splits * LANES * 4),
    )

    partial_inter, partial_total = pl.pallas_call(
        kernel,
        out_shape=(
            jax.ShapeDtypeStruct((num_splits, 1, LANES), jnp.float32),
            jax.ShapeDtypeStruct((num_splits, 1, LANES), jnp.float32),
        ),
        grid_spec=pltpu.PrefetchScalarGridSpec(
            num_scalar_prefetch=0,
            grid=(num_splits, sps),
            in_specs=[
                pl.BlockSpec((tr, LANES), in_index_map),
                pl.BlockSpec((tr, LANES), in_index_map),
            ],
            out_specs=(
                pl.BlockSpec((1, 1, LANES), lambda c, k: (c, 0, 0)),
                pl.BlockSpec((1, 1, LANES), lambda c, k: (c, 0, 0)),
            ),
            scratch_shapes=[
                pltpu.VMEM((1, LANES), jnp.float32),
                pltpu.VMEM((1, LANES), jnp.float32),
            ],
        ),
        compiler_params=pltpu.CompilerParams(
            dimension_semantics=dims,
            vmem_limit_bytes=48 * 1024 * 1024),
        cost_estimate=cost,
    )(x2, t2)

    # Tiny epilogue: combine per-split lane partials and form the IoU.
    intersection = jnp.sum(partial_inter)
    total = jnp.sum(partial_total)
    union = total - intersection
    return (intersection + smooth) / (union + smooth)


def iou_ref(inputs, targets, smooth=1.0):
    s = jax.nn.sigmoid(inputs.astype(jnp.float32)).ravel()
    t = targets.astype(jnp.float32).ravel()
    intersection = jnp.sum(s * t)
    total = jnp.sum(s + t)
    union = total - intersection
    return (intersection + smooth) / (union + smooth)


if __name__ == "__main__":
    key = jax.random.PRNGKey(0)
    k1, k2, k3, k4, k5, k6 = jax.random.split(key, 6)

    # Case 1: lane-aligned f32 segmentation logits/targets (N, C, H, W).
    x = jax.random.normal(k1, (2, 4, 16, 16), dtype=jnp.float32)
    targets = (jax.random.uniform(k2, (2, 4, 16, 16)) > 0.5).astype(jnp.float32)
    out = jax.block_until_ready(iou_pallas(x, targets, smooth=1.0))
    ref = jax.block_until_ready(iou_ref(x, targets, smooth=1.0))
    assert jnp.allclose(out, ref, rtol=1e-5, atol=1e-5), (out, ref)

    # Case 2: non-aligned bf16 input (tail pad + native-dtype streaming path).
    xb = jax.random.normal(k3, (2, 3, 17, 19), dtype=jnp.bfloat16)
    tb = (jax.random.uniform(k4, (2, 3, 17, 19)) > 0.5).astype(jnp.bfloat16)
    out_b = jax.block_until_ready(iou_pallas(xb, tb, smooth=1.0))
    ref_b = jax.block_until_ready(iou_ref(xb, tb, smooth=1.0))
    assert jnp.allclose(out_b, ref_b, rtol=1e-4, atol=1e-4), (out_b, ref_b)

    # Case 3: multi-block grid with an over-covering partial last block
    # (exercises the gated mask fast/slow paths via a small tile_rows).
    xc = jax.random.normal(k5, (5, 500), dtype=jnp.float32)
    tc = (jax.random.uniform(k6, (5, 500)) > 0.5).astype(jnp.float32)
    out_c = jax.block_until_ready(iou_pallas(xc, tc, smooth=1.0, tile_rows=8))
    ref_c = jax.block_until_ready(iou_ref(xc, tc, smooth=1.0))
    assert jnp.allclose(out_c, ref_c, rtol=1e-5, atol=1e-5), (out_c, ref_c)

    print("KERNEL_OK")
</pallas_src>

<mosaic_0001>
module attributes {stable_mosaic.version = 11 : i64} {
  func.func @_iou_partial_kernel(%arg0: i32, %arg1: i32, %arg2: memref<16x128xf32, #tpu.memory_space<vmem>>, %arg3: memref<16x128xf32, #tpu.memory_space<vmem>>, %arg4: memref<1x1x128xf32, #tpu.memory_space<vmem>>, %arg5: memref<1x1x128xf32, #tpu.memory_space<vmem>>, %arg6: memref<1x128xf32, #tpu.memory_space<vmem>>, %arg7: memref<1x128xf32, #tpu.memory_space<vmem>>) attributes {dimension_semantics = [#tpu.dimension_semantics<arbitrary>, #tpu.dimension_semantics<arbitrary>], iteration_bounds = array<i64: 1, 1>, scalar_prefetch = 0 : i64, scratch_operands = 2 : i64, tpu.core_type = #tpu.core_type<tc>, window_params = [{transform_indices = @transform_0, window_bounds = array<i64: 16, 128>}, {transform_indices = @transform_1, window_bounds = array<i64: 16, 128>}, {transform_indices = @transform_2, window_bounds = array<i64: 1, 1, 128>}, {transform_indices = @transform_3, window_bounds = array<i64: 1, 1, 128>}]} {
    %c0_i32 = arith.constant 0 : i32
    %0 = arith.cmpi eq, %arg1, %c0_i32 : i32
    %1 = arith.extui %0 : i1 to i32
    %c0_i32_0 = arith.constant 0 : i32
    %2 = arith.cmpi ne, %1, %c0_i32_0 : i32
    scf.if %2 {
      %cst_18 = arith.constant 0.000000e+00 : f32
      %27 = vector.broadcast %cst_18 : f32 to vector<1x128xf32>
      %c0_19 = arith.constant 0 : index
      %c0_20 = arith.constant 0 : index
      %28 = vector.load %arg6[%c0_19, %c0_20] : memref<1x128xf32, #tpu.memory_space<vmem>>, vector<1x128xf32>
      tpu.vector_store %arg6[%c0_19, %c0_20], %27 {strides = array<i32>} : memref<1x128xf32, #tpu.memory_space<vmem>>, vector<1x128xf32>,
      %cst_21 = arith.constant 0.000000e+00 : f32
      %29 = vector.broadcast %cst_21 : f32 to vector<1x128xf32>
      %c0_22 = arith.constant 0 : index
      %c0_23 = arith.constant 0 : index
      %30 = vector.load %arg7[%c0_22, %c0_23] : memref<1x128xf32, #tpu.memory_space<vmem>>, vector<1x128xf32>
      tpu.vector_store %arg7[%c0_22, %c0_23], %29 {strides = array<i32>} : memref<1x128xf32, #tpu.memory_space<vmem>>, vector<1x128xf32>,
    } else {
    }
    %c0 = arith.constant 0 : index
    %c0_1 = arith.constant 0 : index
    %3 = vector.load %arg2[%c0, %c0_1] : memref<16x128xf32, #tpu.memory_space<vmem>>, vector<16x128xf32>
    %c0_2 = arith.constant 0 : index
    %c0_3 = arith.constant 0 : index
    %4 = vector.load %arg3[%c0_2, %c0_3] : memref<16x128xf32, #tpu.memory_space<vmem>>, vector<16x128xf32>
    %cst = arith.constant 5.000000e-01 : f32
    %5 = vector.broadcast %cst : f32 to vector<16x128xf32>
    %6 = arith.mulf %5, %3 : vector<16x128xf32>
    %7 = math.tanh %6 : vector<16x128xf32>
    %cst_4 = arith.constant 1.000000e+00 : f32
    %8 = vector.broadcast %cst_4 : f32 to vector<16x128xf32>
    %9 = arith.addf %7, %8 : vector<16x128xf32>
    %cst_5 = arith.constant 5.000000e-01 : f32
    %10 = vector.broadcast %cst_5 : f32 to vector<16x128xf32>
    %11 = arith.mulf %10, %9 : vector<16x128xf32>
    %c0_6 = arith.constant 0 : index
    %c0_7 = arith.constant 0 : index
    %12 = vector.load %arg6[%c0_6, %c0_7] : memref<1x128xf32, #tpu.memory_space<vmem>>, vector<1x128xf32>
    %13 = arith.mulf %11, %4 : vector<16x128xf32>
    %cst_8 = arith.constant dense<0.000000e+00> : vector<128xf32>
    %14 = vector.multi_reduction <add>, %13, %cst_8 [0] : vector<16x128xf32> to vector<128xf32>
    %15 = vector.shape_cast %14 : vector<128xf32> to vector<1x128xf32>
    %16 = arith.addf %12, %15 : vector<1x128xf32>
    %c0_9 = arith.constant 0 : index
    %c0_10 = arith.constant 0 : index
    %17 = vector.load %arg6[%c0_9, %c0_10] : memref<1x128xf32, #tpu.memory_space<vmem>>, vector<1x128xf32>
    tpu.vector_store %arg6[%c0_9, %c0_10], %16 {strides = array<i32>} : memref<1x128xf32, #tpu.memory_space<vmem>>, vector<1x128xf32>,
    %c0_11 = arith.constant 0 : index
    %c0_12 = arith.constant 0 : index
    %18 = vector.load %arg7[%c0_11, %c0_12] : memref<1x128xf32, #tpu.memory_space<vmem>>, vector<1x128xf32>
    %19 = arith.addf %11, %4 : vector<16x128xf32>
    %cst_13 = arith.constant dense<0.000000e+00> : vector<128xf32>
    %20 = vector.multi_reduction <add>, %19, %cst_13 [0] : vector<16x128xf32> to vector<128xf32>
    %21 = vector.shape_cast %20 : vector<128xf32> to vector<1x128xf32>
    %22 = arith.addf %18, %21 : vector<1x128xf32>
    %c0_14 = arith.constant 0 : index
    %c0_15 = arith.constant 0 : index
    %23 = vector.load %arg7[%c0_14, %c0_15] : memref<1x128xf32, #tpu.memory_space<vmem>>, vector<1x128xf32>
    tpu.vector_store %arg7[%c0_14, %c0_15], %22 {strides = array<i32>} : memref<1x128xf32, #tpu.memory_space<vmem>>, vector<1x128xf32>,
    %c0_i32_16 = arith.constant 0 : i32
    %24 = arith.cmpi eq, %arg1, %c0_i32_16 : i32
    %25 = arith.extui %24 : i1 to i32
    %c0_i32_17 = arith.constant 0 : i32
    %26 = arith.cmpi ne, %25, %c0_i32_17 : i32
    scf.if %26 {
      %c0_18 = arith.constant 0 : index
      %c0_19 = arith.constant 0 : index
      %27 = vector.load %arg6[%c0_18, %c0_19] : memref<1x128xf32, #tpu.memory_space<vmem>>, vector<1x128xf32>
      %28 = vector.shape_cast %27 : vector<1x128xf32> to vector<1x1x128xf32>
      %c0_20 = arith.constant 0 : index
      %c0_21 = arith.constant 0 : index
      %c0_22 = arith.constant 0 : index
      %29 = vector.load %arg4[%c0_20, %c0_21, %c0_22] : memref<1x1x128xf32, #tpu.memory_space<vmem>>, vector<1x1x128xf32>
      tpu.vector_store %arg4[%c0_20, %c0_21, %c0_22], %28 {strides = array<i32>} : memref<1x1x128xf32, #tpu.memory_space<vmem>>, vector<1x1x128xf32>,
      %c0_23 = arith.constant 0 : index
      %c0_24 = arith.constant 0 : index
      %30 = vector.load %arg7[%c0_23, %c0_24] : memref<1x128xf32, #tpu.memory_space<vmem>>, vector<1x128xf32>
      %31 = vector.shape_cast %30 : vector<1x128xf32> to vector<1x1x128xf32>
      %c0_25 = arith.constant 0 : index
      %c0_26 = arith.constant 0 : index
      %c0_27 = arith.constant 0 : index
      %32 = vector.load %arg5[%c0_25, %c0_26, %c0_27] : memref<1x1x128xf32, #tpu.memory_space<vmem>>, vector<1x1x128xf32>
      tpu.vector_store %arg5[%c0_25, %c0_26, %c0_27], %31 {strides = array<i32>} : memref<1x1x128xf32, #tpu.memory_space<vmem>>, vector<1x1x128xf32>,
    } else {
    }
    return
  }
  func.func @transform_0(%arg0: i32, %arg1: i32) -> (i32, i32) {
    %c1_i32 = arith.constant 1 : i32
    %0 = arith.muli %arg0, %c1_i32 : i32
    %1 = arith.addi %0, %arg1 : i32
    %c0_i32 = arith.constant 0 : i32
    %2 = arith.minsi %1, %c0_i32 : i32
    %c0_i32_0 = arith.constant 0 : i32
    %c0_i32_1 = arith.constant 0 : i32
    return %2, %c0_i32_0 : i32, i32
  }
  func.func @transform_1(%arg0: i32, %arg1: i32) -> (i32, i32) {
    %c1_i32 = arith.constant 1 : i32
    %0 = arith.muli %arg0, %c1_i32 : i32
    %1 = arith.addi %0, %arg1 : i32
    %c0_i32 = arith.constant 0 : i32
    %2 = arith.minsi %1, %c0_i32 : i32
    %c0_i32_0 = arith.constant 0 : i32
    %c0_i32_1 = arith.constant 0 : i32
    return %2, %c0_i32_0 : i32, i32
  }
  func.func @transform_2(%arg0: i32, %arg1: i32) -> (i32, i32, i32) {
    %c0_i32 = arith.constant 0 : i32
    %c0_i32_0 = arith.constant 0 : i32
    %c0_i32_1 = arith.constant 0 : i32
    return %arg0, %c0_i32, %c0_i32_0 : i32, i32, i32
  }
  func.func @transform_3(%arg0: i32, %arg1: i32) -> (i32, i32, i32) {
    %c0_i32 = arith.constant 0 : i32
    %c0_i32_0 = arith.constant 0 : i32
    %c0_i32_1 = arith.constant 0 : i32
    return %arg0, %c0_i32, %c0_i32_0 : i32, i32, i32
  }
}

</mosaic_0001>

<bundles_post_ra>
// kernel: tpu_custom_call.1
= control target key start
LH: loop header
LB: loop body
LE: loop exit
PB: predicated region body
PF: predicated region fallthrough
CT: control target
= control target key end

     0   :  { %9 = vsyncpa [#allocation5], 0  ;;  %s336_s0 = inlined_call_operand.hbm [shape: f32[16,128], index: 0, kind: input, shape index: {}]   ;;  %s337_s1 = inlined_call_operand.hbm [shape: f32[16,128], index: 1, kind: input, shape index: {}]   ;;  %s338_s2 = inlined_call_operand.hbm [shape: f32[1,1,128], index: 2, kind: output, shape index: {0}]   ;;  %s339_s3 = inlined_call_operand.hbm [shape: f32[1,1,128], index: 3, kind: output, shape index: {1}]  }
   0x1   :  { %10 = vsyncpa [#allocation8], 0 }
   0x2   :  { %11 = vsyncpa [#allocation6], 0 }
   0x3   :  { %12 = vsyncpa [#allocation11], 0  ;;  %s253_s12 = smov [#allocation4]   ;;  %s157_s16 = scalar_lea.hbm %s336_s0, 256 }
   0x4   :  { %s24_s13 = sshll.u32 %s253_s12, 4  ;;  %p158_p0 = scmp.ne.s32.totalorder %s336_s0, %s157_s16  ;;  %s25_s13 = int_to_ptr.vmem [resolvable:$true] %s24_s13 }
   0x5   :  { %p161_p1 = scmp.lt.u32.totalorder %s157_s16, %s336_s0 }
   0x7   :  { %p163_p2 = pnand %p161_p1, %p158_p0 }
   0x9   :  { %166 = shalt.err (!%p163_p2)
}
   0xa   :  { %s167_s21 = scalar_lea.vmem %s25_s13, 256  ;;  %p172_p4 = scmp.lt.s32.totalorder %s25_s13, %s25_s13 }
   0xb   :  { %p168_p3 = scmp.ne.s32.totalorder %s25_s13, %s167_s21  ;;  %p173_p5 = scmp.lt.s32.totalorder %s167_s21, %s167_s21 }
   0xd   :  { %p174_p6 = por %p173_p5, %p172_p4 }
   0xf   :  { %p175_p7 = pnand %p174_p6, %p168_p3 }
  0x11   :  { %178 = shalt.err (!%p175_p7)
}
  0x12   :  { %s254_s22 = smov 128   ;;  %s255_s23 = smov 8  }
  0x13   :  { %30 = dma.hbm_to_vmem [thread:$0]  %s336_s0, 256, %s25_s13, [#allocation5], %s254_s22, %s254_s22, %s255_s23  }
  0x14   :  { %s256_s26 = smov [#allocation7]   ;;  %s179_s30 = scalar_lea.hbm %s337_s1, 256 }
  0x15   :  { %s42_s27 = sshll.u32 %s256_s26, 4  ;;  %p180_p8 = scmp.ne.s32.totalorder %s337_s1, %s179_s30  ;;  %s43_s27 = int_to_ptr.vmem [resolvable:$true] %s42_s27 }
  0x16   :  { %p183_p9 = scmp.lt.u32.totalorder %s179_s30, %s337_s1 }
  0x18   :  { %p185_p10 = pnand %p183_p9, %p180_p8 }
  0x1a   :  { %188 = shalt.err (!%p185_p10)
}
  0x1b   :  { %s189_s8 = scalar_lea.vmem %s43_s27, 256  ;;  %p194_p12 = scmp.lt.s32.totalorder %s43_s27, %s43_s27 }
  0x1c   :  { %p190_p11 = scmp.ne.s32.totalorder %s43_s27, %s189_s8  ;;  %p195_p13 = scmp.lt.s32.totalorder %s189_s8, %s189_s8 }
  0x1e   :  { %p196_p0 = por %p195_p13, %p194_p12 }
  0x20   :  { %p197_p1 = pnand %p196_p0, %p190_p11 }
  0x22   :  { %200 = shalt.err (!%p197_p1)
}
  0x23   :  { %48 = dma.hbm_to_vmem [thread:$0]  %s337_s1, 256, %s43_s27, [#allocation8], %s254_s22, %s254_s22, %s255_s23  }
  0x24   :  { %245 = dma.done.wait [#allocation5], 256  }
  0x25   :  { %246 = vsyncadd [#allocation5], 4294967040 }
  0x26   :  { %247 = dma.done.wait [#allocation8], 256  }
  0x27   :  { %248 = vsyncadd [#allocation8], 4294967040  ;;  %v257_v0 = vmov 0.0   ;;  %v69_v1 = vld [vmem:[#allocation4] sm:$0xff]  ;;  %v70_v2 = vld [vmem:[#allocation4 + $0x8] sm:$0xff]  ;;  %s258_s1 = smov [#allocation9]  }
  0x28   :  { %67 = vst [vmem:[#allocation2] sm:$0x1] %v257_v0  ;;  %68 = vst [vmem:[#allocation3] sm:$0x1] %v257_v0  ;;  %v73_v3 = vmul.f32 0.5, %v69_v1  ;;  %v74_v4 = vmul.f32 0.5, %v70_v2 }
  0x29   :  { %v71_v8 = vld [vmem:[#allocation7] sm:$0xff]  ;;  %v72_v10 = vld [vmem:[#allocation7 + $0x8] sm:$0xff]  ;;  %s118_s10 = sshll.u32 %s258_s1, 4  ;;  %s259_s11 = smov [#allocation10]   ;;  %s119_s10 = int_to_ptr.vmem [resolvable:$true] %s118_s10 }
  0x2a   :  { %153 = vtanh.f32 %v73_v3  ;;  %s128_s12 = sshll.u32 %s259_s11, 4  ;;  %s201_s13 = scalar_lea.vmem %s119_s10, 16  ;;  %s304_s12 = int_to_ptr.vmem [resolvable:$true] %s128_s12 }
  0x2b   :  { %155 = vtanh.f32 %v74_v4  ;;  %p202_p2 = scmp.ne.s32.totalorder %s119_s10, %s201_s13  ;;  %s205_s14 = scalar_lea.vmem %s119_s10, 32 }
  0x2c   :  { %p206_p3 = scmp.lt.s32.totalorder %s119_s10, %s119_s10  ;;  %p207_p4 = scmp.lt.s32.totalorder %s205_s14, %s201_s13 }
  0x2e   :  { %p208_p5 = por %p207_p4, %p206_p3 }
  0x2f   :  { %v81_v29 = vld [vmem:[#allocation2] sm:$0x1]  ;;  %v93_v30 = vld [vmem:[#allocation3] sm:$0x1] }
  0x30   :  { %p209_p6 = pnand %p208_p5, %p202_p2 }
  0x34   :  { %v154_v5 = vpop.eup %153 }
  0x35   :  { %v156_v6 = vpop.eup %155  ;;  %v77_v7 = vadd.f32 1.0, %v154_v5 }
  0x36   :  { %v78_v9 = vadd.f32 1.0, %v156_v6 }
  0x37   :  { %v79_v11 = vmul.f32 0.5, %v77_v7 }
  0x38   :  { %v80_v12 = vmul.f32 0.5, %v78_v9 }
  0x39   :  { %v82_v13 = vmul.f32 %v79_v11, %v71_v8  ;;  %v94_v14 = vadd.f32 %v79_v11, %v71_v8 }
  0x3a   :  { %v83_v15 = vmul.f32 %v80_v12, %v72_v10  ;;  %v95_v16 = vadd.f32 %v80_v12, %v72_v10 }
  0x3c   :  { %v84_v17 = vadd.f32 %v83_v15, %v82_v13  ;;  %v96_v18 = vadd.f32 %v95_v16, %v94_v14 }
  0x3e   :  { %v85_v19 = vrot.slane %v84_v17, 4  ;;  %v97_v20 = vrot.slane %v96_v18, 4 }
  0x40   :  { %v86_v21 = vadd.f32 %v85_v19, %v84_v17  ;;  %v98_v22 = vadd.f32 %v97_v20, %v96_v18 }
  0x42   :  { %v87_v23 = vrot.slane %v86_v21, 2  ;;  %v99_v24 = vrot.slane %v98_v22, 2 }
  0x44   :  { %v88_v25 = vadd.f32 %v87_v23, %v86_v21  ;;  %v100_v26 = vadd.f32 %v99_v24, %v98_v22 }
  0x46   :  { %v89_v27 = vrot.slane %v88_v25, 1  ;;  %v101_v28 = vrot.slane %v100_v26, 1 }
  0x48   :  { %v90_v31 = vadd.f32 %v89_v27, %v88_v25  ;;  %v102_v32 = vadd.f32 %v101_v28, %v100_v26 }
  0x4a   :  { %v91_v33 = vadd.f32 %v90_v31, %v81_v29  ;;  %v103_v34 = vadd.f32 %v102_v32, %v93_v30 }
  0x4c   :  { %92 = vst [vmem:[#allocation2] sm:$0x1] %v91_v33  ;;  %104 = vst [vmem:[#allocation3] sm:$0x1] %v103_v34 }
  0x53   :  { %v108_v35 = vld [vmem:[#allocation2] sm:$0x1]  ;;  %v110_v36 = vld [vmem:[#allocation3] sm:$0x1] }
  0x54   :  { %109 = vst [vmem:[#allocation9] sm:$0x1] %v108_v35  ;;  %111 = vst [vmem:[#allocation10] sm:$0x1] %v110_v36 }
  0x55   :  { %212 = shalt.err (!%p209_p6)
}
  0x56   :  { %s213_s17 = scalar_lea.hbm %s338_s2, 16 }
  0x57   :  { %p214_p7 = scmp.ne.s32.totalorder %s338_s2, %s213_s17  ;;  %p217_p8 = scmp.lt.u32.totalorder %s213_s17, %s338_s2 }
  0x59   :  { %p219_p9 = pnand %p217_p8, %p214_p7 }
  0x5b   :  { %222 = shalt.err (!%p219_p9)
}
  0x5c   :  { %121 = dma.vmem_to_hbm [thread:$0]  %s119_s10, 16, %s338_s2, [#allocation6]  }
  0x5d   :  { %s223_s24 = scalar_lea.vmem %s304_s12, 16  ;;  %s227_s25 = scalar_lea.vmem %s304_s12, 32 }
  0x5e   :  { %p224_p10 = scmp.ne.s32.totalorder %s304_s12, %s223_s24  ;;  %p228_p11 = scmp.lt.s32.totalorder %s304_s12, %s304_s12 }
  0x5f   :  { %p229_p12 = scmp.lt.s32.totalorder %s227_s25, %s223_s24 }
  0x61   :  { %p230_p13 = por %p229_p12, %p228_p11 }
  0x63   :  { %p231_p0 = pnand %p230_p13, %p224_p10 }
  0x65   :  { %234 = shalt.err (!%p231_p0)
}
  0x66   :  { %s235_s28 = scalar_lea.hbm %s339_s3, 16 }
  0x67   :  { %p236_p1 = scmp.ne.s32.totalorder %s339_s3, %s235_s28  ;;  %p239_p2 = scmp.lt.u32.totalorder %s235_s28, %s339_s3 }
  0x69   :  { %p241_p3 = pnand %p239_p2, %p236_p1 }
  0x6b   :  { %244 = shalt.err (!%p241_p3)
}
  0x6c   :  { %131 = dma.vmem_to_hbm [thread:$0]  %s304_s12, 16, %s339_s3, [#allocation11]  }
  0x6d   :  { %249 = dma.done.wait [#allocation6], 16  }
  0x6e   :  { %250 = vsyncadd [#allocation6], 4294967280 }
  0x6f   :  { %251 = dma.done.wait [#allocation11], 16  }
  0x70   :  { %252 = vsyncadd [#allocation11], 4294967280 }
  0x71   :  { %138 = vsyncpa [#allocation5], 1 }
  0x72   :  { %139 = vsyncpa [#allocation8], 1 }
  0x73   :  { %140 = vsyncpa [#allocation6], 1 }
  0x74   :  { %141 = vsyncpa [#allocation11], 1 }

</bundles_post_ra>
